<compile_context>
chip_gen: v7x
topology: tpu7x:2x2x1
jax: 0.10.0
libtpu: 0.0.40
codegen_flags: <defaults>
</compile_context>

<pallas_src>
import functools

import jax
import jax.numpy as jnp
from jax import lax
from jax.experimental import pallas as pl
from jax.experimental.pallas import tpu as pltpu


def _round_up(x, m):
    return (x + m - 1) // m * m


def _tpu_vmem_capacity_bytes():
    """Per-TensorCore VMEM capacity; conservative default if the query fails."""
    try:
        cap = int(pltpu.get_tpu_info().vmem_capacity_bytes)
        return max(32 << 20, min(cap, 256 << 20))
    except Exception:
        return 64 << 20  # v7x-safe default (v5e/v6e have 128 MiB)


# --------------------------------------------------------------------------
# Pass 1: K / V projections (once per batch element, bf16 outputs).
# --------------------------------------------------------------------------
def _kv_proj_kernel(x_ref, wk_ref, bk_ref, wv_ref, bv_ref, k_ref, v_ref):
    x = x_ref[...]                                            # (TL, D_pad) bf16
    k = jnp.dot(x, wk_ref[...], preferred_element_type=jnp.float32) + bk_ref[...]
    v = jnp.dot(x, wv_ref[...], preferred_element_type=jnp.float32) + bv_ref[...]
    k_ref[...] = k.astype(jnp.bfloat16)
    v_ref[...] = v.astype(jnp.bfloat16)


# --------------------------------------------------------------------------
# Shared online-softmax update for one KV chunk.
# --------------------------------------------------------------------------
def _flash_step(q, k_c, v_c, ones, m_sc, l_sc, acc_sc, mask=None):
    # score (TQ, TKC): contract the feature axes of Q and K (A @ B^T on the MXU).
    s = lax.dot_general(q, k_c, (((1,), (1,)), ((), ())),
                        preferred_element_type=jnp.float32)
    if mask is not None:
        s = jnp.where(mask, s, -1e30)
    m_prev = m_sc[...]
    m_new = jnp.maximum(m_prev, jnp.max(s, axis=-1, keepdims=True))
    alpha = jnp.exp(m_prev - m_new)
    p = jnp.exp(s - m_new).astype(jnp.bfloat16)               # unnormalized probs
    # Row-sum via an MXU ones-matmul: keeps the second lane-reduce off the XLU.
    l_sc[...] = alpha * l_sc[...] + jnp.dot(p, ones, preferred_element_type=jnp.float32)
    acc_sc[...] = alpha * acc_sc[...] + jnp.dot(p, v_c, preferred_element_type=jnp.float32)
    m_sc[...] = m_new


# --------------------------------------------------------------------------
# Pass 2a: resident-K/V flash attention + residual.  Grid (B, n_q); the KV
# loop runs inside the kernel over pl.ds chunks of the VMEM-resident K/V.
# --------------------------------------------------------------------------
def _attn_resident_kernel(L, n_chunks, TKC, mask_last,
                          gamma_ref, x_ref, k_ref, v_ref, wq_ref, bq_ref,
                          o_ref, q_sc, m_sc, l_sc, acc_sc):
    # Project Q once per (batch, query-tile); the x tile is resident anyway
    # for the residual add.
    q = jnp.dot(x_ref[...], wq_ref[...], preferred_element_type=jnp.float32)
    q_sc[...] = (q + bq_ref[...]).astype(jnp.bfloat16)
    m_sc[...] = jnp.full_like(m_sc, -jnp.inf)
    l_sc[...] = jnp.zeros_like(l_sc)
    acc_sc[...] = jnp.zeros_like(acc_sc)

    ones = jnp.ones((TKC, 128), jnp.bfloat16)
    n_full = n_chunks - 1 if mask_last else n_chunks

    def do_chunk(off, mask=None):
        k_c = k_ref[pl.ds(off, TKC), :]
        v_c = v_ref[pl.ds(off, TKC), :]
        _flash_step(q_sc[...], k_c, v_c, ones, m_sc, l_sc, acc_sc, mask=mask)

    # Chunks that contain only real keys: no masking work at all.
    if n_full > 0:
        if n_full <= 8:
            for c in range(n_full):                 # static offsets, unrolled
                do_chunk(c * TKC)
        else:
            def body(c, carry):
                do_chunk(pl.multiple_of(c * TKC, TKC))
                return carry
            lax.fori_loop(0, n_full, body, 0, unroll=2)

    if mask_last:
        # Only the last chunk can contain padded key rows -> mask only here.
        off = (n_chunks - 1) * TKC
        key_pos = off + lax.broadcasted_iota(jnp.int32, (1, TKC), 1)
        do_chunk(off, mask=key_pos < L)

    inv = pl.reciprocal(l_sc[:, :1], approx=True)             # EUP, once per tile
    ctx = acc_sc[...] * inv
    o_ref[...] = (gamma_ref[0] * ctx + x_ref[...].astype(jnp.float32)).astype(o_ref.dtype)


# --------------------------------------------------------------------------
# Pass 2b: tiled fallback (K/V too large to keep resident).  Grid (B,n_q,n_kv)
# with online-softmax scratch carried across the "arbitrary" KV axis.
# --------------------------------------------------------------------------
def _attn_tiled_kernel(L, needs_key_mask,
                       gamma_ref, x_ref, k_ref, v_ref, wq_ref, bq_ref,
                       o_ref, q_sc, m_sc, l_sc, acc_sc):
    kv = pl.program_id(2)
    n_kv = pl.num_programs(2)
    TK = k_ref.shape[0]

    @pl.when(kv == 0)
    def _():
        q = jnp.dot(x_ref[...], wq_ref[...], preferred_element_type=jnp.float32)
        q_sc[...] = (q + bq_ref[...]).astype(jnp.bfloat16)
        m_sc[...] = jnp.full_like(m_sc, -jnp.inf)
        l_sc[...] = jnp.zeros_like(l_sc)
        acc_sc[...] = jnp.zeros_like(acc_sc)

    mask = None
    if needs_key_mask:
        key_pos = kv * TK + lax.broadcasted_iota(jnp.int32, (1, TK), 1)
        mask = key_pos < L
    ones = jnp.ones((TK, 128), jnp.bfloat16)
    _flash_step(q_sc[...], k_ref[...], v_ref[...], ones, m_sc, l_sc, acc_sc, mask=mask)

    @pl.when(kv == n_kv - 1)
    def _():
        inv = pl.reciprocal(l_sc[:, :1], approx=True)
        ctx = acc_sc[...] * inv
        o_ref[...] = (gamma_ref[0] * ctx + x_ref[...].astype(jnp.float32)).astype(o_ref.dtype)


# --------------------------------------------------------------------------
# Wrapper
# --------------------------------------------------------------------------
def sagan_attention(x, wq, bq, wk, bk, wv, bv, gamma):
    """x: (B, L, D) f32.  wq/wk: (D, Dr), wv: (D, D) stored as (in, out).
    bq/bk: (Dr,), bv: (D,), gamma: scalar / (1,).

    TODO(synk): the module's optional additive `mask` argument and attention
    dropout are not implemented (n_heads=1, mask=None, dropout=None path).
    """
    B, L, D = x.shape
    Dr = wq.shape[1]
    bf16, f32 = jnp.bfloat16, jnp.float32

    D_pad = _round_up(D, 128)
    Dr_pad = _round_up(Dr, 128)
    vmem_cap = _tpu_vmem_capacity_bytes()

    # ---- tile selection (KV-chunk TKC is always >= TQ and a multiple of it) ----
    if D_pad <= 256:
        TQ, TKC = 512, 1024
    elif D_pad <= 1024:
        TQ, TKC = 512, 512
    else:
        TQ, TKC = 256, 256
    L_pad8 = _round_up(L, 8)
    if L_pad8 <= TQ:
        TQ = TKC = L_pad = L_pad8          # single query tile / single KV chunk
    else:
        L_pad = _round_up(L, TKC)          # last chunk always has >=1 real key
    TL = TKC                               # pass-1 length tile

    n_q = L_pad // TQ
    n_chunks = L_pad // TKC
    n_l = L_pad // TL
    needs_key_mask = L_pad != L
    need_pad = needs_key_mask or (D_pad != D)

    # ---- bf16 padded inputs (fast path when no padding is needed) ----
    if need_pad:
        x_p = jnp.zeros((B, L_pad, D_pad), bf16).at[:, :L, :D].set(x.astype(bf16))
    else:
        x_p = x.astype(bf16)

    def pad_w(w, di, do):
        if w.shape == (di, do):
            return w.astype(bf16)
        return jnp.zeros((di, do), bf16).at[:w.shape[0], :w.shape[1]].set(w.astype(bf16))

    def pad_b(b, do):
        b2 = jnp.reshape(b, (1, -1)).astype(f32)
        if b2.shape[1] == do:
            return b2
        return jnp.zeros((1, do), f32).at[:, :b2.shape[1]].set(b2)

    wq_p, wk_p = pad_w(wq, D_pad, Dr_pad), pad_w(wk, D_pad, Dr_pad)
    wv_p = pad_w(wv, D_pad, D_pad)
    bq_p, bk_p, bv_p = pad_b(bq, Dr_pad), pad_b(bk, Dr_pad), pad_b(bv, D_pad)
    gamma_p = jnp.reshape(gamma, (1,)).astype(f32)

    # ---------------- Pass 1: K / V projections ----------------
    blk1 = 2 * (TL * D_pad * 2 + D_pad * Dr_pad * 2 + Dr_pad * 4
                + D_pad * D_pad * 2 + D_pad * 4
                + TL * Dr_pad * 2 + TL * D_pad * 2)
    vmem1 = min(int(0.90 * vmem_cap), max(24 << 20, blk1 + (4 << 20)))

    k_all, v_all = pl.pallas_call(
        _kv_proj_kernel,
        out_shape=(jax.ShapeDtypeStruct((B, L_pad, Dr_pad), bf16),
                   jax.ShapeDtypeStruct((B, L_pad, D_pad), bf16)),
        grid_spec=pltpu.PrefetchScalarGridSpec(
            num_scalar_prefetch=0,
            grid=(B, n_l),
            in_specs=[
                pl.BlockSpec((None, TL, D_pad), lambda b, l: (b, l, 0)),   # x
                pl.BlockSpec((D_pad, Dr_pad), lambda b, l: (0, 0)),        # Wk
                pl.BlockSpec((1, Dr_pad), lambda b, l: (0, 0)),            # bk
                pl.BlockSpec((D_pad, D_pad), lambda b, l: (0, 0)),         # Wv
                pl.BlockSpec((1, D_pad), lambda b, l: (0, 0)),             # bv
            ],
            out_specs=[
                pl.BlockSpec((None, TL, Dr_pad), lambda b, l: (b, l, 0)),  # K
                pl.BlockSpec((None, TL, D_pad), lambda b, l: (b, l, 0)),   # V
            ]),
        compiler_params=pltpu.CompilerParams(
            dimension_semantics=("parallel", "parallel"),
            vmem_limit_bytes=vmem1),
    )(x_p, wk_p, bk_p, wv_p, bv_p)

    # ---------------- Pass 2: flash attention + residual ----------------
    fixed2 = (2 * TQ * D_pad * 2          # x tile (bf16, double-buffered)
              + 2 * TQ * D_pad * 4        # out tile (f32)
              + 2 * D_pad * Dr_pad * 2    # Wq
              + 2 * Dr_pad * 4            # bq
              + TQ * Dr_pad * 2           # q scratch
              + 2 * TQ * 128 * 4          # m + l scratch (lane-padded)
              + TQ * D_pad * 4)           # acc scratch
    resident_kv = 2 * L_pad * (Dr_pad + D_pad) * 2   # K+V bf16, double-buffered
    use_resident = resident_kv + fixed2 + (6 << 20) <= int(0.78 * vmem_cap)

    scratch = [pltpu.VMEM((TQ, Dr_pad), bf16),   # Q tile
               pltpu.VMEM((TQ, 1), f32),         # running max
               pltpu.VMEM((TQ, 128), f32),       # running sum (MXU ones-matmul cols)
               pltpu.VMEM((TQ, D_pad), f32)]     # output accumulator

    if use_resident:
        kernel = functools.partial(_attn_resident_kernel,
                                   L, n_chunks, TKC, needs_key_mask)
        vmem2 = min(int(0.92 * vmem_cap),
                    max(24 << 20, resident_kv + fixed2 + (6 << 20)))
        out_p = pl.pallas_call(
            kernel,
            out_shape=jax.ShapeDtypeStruct((B, L_pad, D_pad), f32),
            grid_spec=pltpu.PrefetchScalarGridSpec(
                num_scalar_prefetch=0,
                grid=(B, n_q),
                in_specs=[
                    pl.BlockSpec(memory_space=pltpu.MemorySpace.SMEM),            # gamma
                    pl.BlockSpec((None, TQ, D_pad), lambda b, q: (b, q, 0)),      # x
                    pl.BlockSpec((None, L_pad, Dr_pad), lambda b, q: (b, 0, 0)),  # K resident
                    pl.BlockSpec((None, L_pad, D_pad), lambda b, q: (b, 0, 0)),   # V resident
                    pl.BlockSpec((D_pad, Dr_pad), lambda b, q: (0, 0)),           # Wq
                    pl.BlockSpec((1, Dr_pad), lambda b, q: (0, 0)),               # bq
                ],
                out_specs=pl.BlockSpec((None, TQ, D_pad), lambda b, q: (b, q, 0)),
                scratch_shapes=scratch),
            compiler_params=pltpu.CompilerParams(
                dimension_semantics=("parallel", "parallel"),
                vmem_limit_bytes=vmem2),
        )(gamma_p, x_p, k_all, v_all, wq_p, bq_p)
    else:
        TK = TKC
        n_kv = L_pad // TK
        kernel = functools.partial(_attn_tiled_kernel, L, needs_key_mask)
        blk2 = fixed2 + 2 * TK * (Dr_pad + D_pad) * 2
        vmem2 = min(int(0.92 * vmem_cap), max(24 << 20, blk2 + (6 << 20)))
        out_p = pl.pallas_call(
            kernel,
            out_shape=jax.ShapeDtypeStruct((B, L_pad, D_pad), f32),
            grid_spec=pltpu.PrefetchScalarGridSpec(
                num_scalar_prefetch=0,
                grid=(B, n_q, n_kv),
                in_specs=[
                    pl.BlockSpec(memory_space=pltpu.MemorySpace.SMEM),              # gamma
                    pl.BlockSpec((None, TQ, D_pad), lambda b, q, k: (b, q, 0)),     # x
                    pl.BlockSpec((None, TK, Dr_pad), lambda b, q, k: (b, k, 0)),    # K tile
                    pl.BlockSpec((None, TK, D_pad), lambda b, q, k: (b, k, 0)),     # V tile
                    pl.BlockSpec((D_pad, Dr_pad), lambda b, q, k: (0, 0)),          # Wq
                    pl.BlockSpec((1, Dr_pad), lambda b, q, k: (0, 0)),              # bq
                ],
                out_specs=pl.BlockSpec((None, TQ, D_pad), lambda b, q, k: (b, q, 0)),
                scratch_shapes=scratch),
            compiler_params=pltpu.CompilerParams(
                dimension_semantics=("parallel", "parallel", "arbitrary"),
                vmem_limit_bytes=vmem2),
        )(gamma_p, x_p, k_all, v_all, wq_p, bq_p)

    if need_pad:
        return out_p[:, :L, :D]
    return out_p


def sagan_attention_ref(x, wq, bq, wk, bk, wv, bv, gamma):
    q = x @ wq + bq
    k = x @ wk + bk
    v = x @ wv + bv
    score = jnp.einsum("bld,bmd->blm", q, k)
    att = jax.nn.softmax(score, axis=-1)
    ctx = jnp.einsum("blm,bmd->bld", att, v)
    return gamma * ctx + x


if __name__ == "__main__":
    # Module hyper-parameters (small, consistent with the forward pass).
    B, dim, reduction = 2, 32, 8
    out_size = dim // reduction          # 4

    key = jax.random.PRNGKey(0)
    kx, kq, kbq, kk, kbk, kvv, kbv = jax.random.split(key, 7)

    # nn.Linear weights are (out, in); stored transposed as (in, out) here.
    scale = 1.0 / jnp.sqrt(dim)
    wq = jax.random.uniform(kq, (dim, out_size), jnp.float32, -scale, scale)
    bq = jax.random.uniform(kbq, (out_size,), jnp.float32, -scale, scale)
    wk = jax.random.uniform(kk, (dim, out_size), jnp.float32, -scale, scale)
    bk = jax.random.uniform(kbk, (out_size,), jnp.float32, -scale, scale)
    wv = jax.random.uniform(kvv, (dim, dim), jnp.float32, -scale, scale)
    bv = jax.random.uniform(kbv, (dim,), jnp.float32, -scale, scale)

    # gamma initializes to 0.0 in the module; also test non-trivial gamma and
    # a length that exercises the key-padding mask path.
    for L, g in ((16, 0.0), (16, 0.5), (20, 0.5)):
        x = jax.random.normal(jax.random.fold_in(kx, L), (B, L, dim), jnp.float32)
        gamma = jnp.array([g], dtype=jnp.float32)
        out = jax.block_until_ready(sagan_attention(x, wq, bq, wk, bk, wv, bv, gamma))
        ref = sagan_attention_ref(x, wq, bq, wk, bk, wv, bv, gamma[0])
        assert out.shape == (B, L, dim)
        err = jnp.max(jnp.abs(out - ref))
        # bf16 MXU operands / bf16 x + approx reciprocal -> loosened tolerance.
        assert jnp.allclose(out, ref, atol=3e-2, rtol=3e-2), (
            f"mismatch at L={L}, gamma={g}: max abs err {err}")

    print("KERNEL_OK")
</pallas_src>

<mosaic_0001>
module attributes {stable_mosaic.version = 11 : i64} {
  func.func @_kv_proj_kernel(%arg0: i32, %arg1: i32, %arg2: memref<1x16x128xbf16, #tpu.memory_space<vmem>>, %arg3: memref<128x128xbf16, #tpu.memory_space<vmem>>, %arg4: memref<1x128xf32, #tpu.memory_space<vmem>>, %arg5: memref<128x128xbf16, #tpu.memory_space<vmem>>, %arg6: memref<1x128xf32, #tpu.memory_space<vmem>>, %arg7: memref<1x16x128xbf16, #tpu.memory_space<vmem>>, %arg8: memref<1x16x128xbf16, #tpu.memory_space<vmem>>) attributes {dimension_semantics = [#tpu.dimension_semantics<parallel>, #tpu.dimension_semantics<parallel>], iteration_bounds = array<i64: 2, 1>, scalar_prefetch = 0 : i64, scratch_operands = 0 : i64, tpu.core_type = #tpu.core_type<tc>, window_params = [{transform_indices = @transform_0, window_bounds = array<i64: 1, 16, 128>}, {pipeline_mode = #tpu.pipeline_mode<synchronous>, transform_indices = @transform_1, window_bounds = array<i64: 128, 128>}, {pipeline_mode = #tpu.pipeline_mode<synchronous>, transform_indices = @transform_2, window_bounds = array<i64: 1, 128>}, {pipeline_mode = #tpu.pipeline_mode<synchronous>, transform_indices = @transform_3, window_bounds = array<i64: 128, 128>}, {pipeline_mode = #tpu.pipeline_mode<synchronous>, transform_indices = @transform_4, window_bounds = array<i64: 1, 128>}, {transform_indices = @transform_5, window_bounds = array<i64: 1, 16, 128>}, {transform_indices = @transform_6, window_bounds = array<i64: 1, 16, 128>}]} {
    %c0 = arith.constant 0 : index
    %c0_0 = arith.constant 0 : index
    %c0_1 = arith.constant 0 : index
    %0 = vector.load %arg2[%c0, %c0_0, %c0_1] : memref<1x16x128xbf16, #tpu.memory_space<vmem>>, vector<1x16x128xbf16>
    %1 = vector.shape_cast %0 : vector<1x16x128xbf16> to vector<16x128xbf16>
    %c0_2 = arith.constant 0 : index
    %c0_3 = arith.constant 0 : index
    %2 = vector.load %arg3[%c0_2, %c0_3] : memref<128x128xbf16, #tpu.memory_space<vmem>>, vector<128x128xbf16>
    %cst = arith.constant dense<0.000000e+00> : vector<16x128xf32>
    %3 = tpu.matmul %1, %2, %cst {dimension_numbers = #tpu.dot_dimension_numbers<[1], [0], [0], [1], [0, 0, 1, 1], [], []>} : vector<16x128xbf16>, vector<128x128xbf16>, vector<16x128xf32> -> vector<16x128xf32>
    %c0_4 = arith.constant 0 : index
    %c0_5 = arith.constant 0 : index
    %4 = vector.load %arg4[%c0_4, %c0_5] : memref<1x128xf32, #tpu.memory_space<vmem>>, vector<1x128xf32>
    %5 = vector.broadcast %4 : vector<1x128xf32> to vector<16x128xf32>
    %6 = arith.addf %3, %5 : vector<16x128xf32>
    %c0_6 = arith.constant 0 : index
    %c0_7 = arith.constant 0 : index
    %7 = vector.load %arg5[%c0_6, %c0_7] : memref<128x128xbf16, #tpu.memory_space<vmem>>, vector<128x128xbf16>
    %cst_8 = arith.constant dense<0.000000e+00> : vector<16x128xf32>
    %8 = tpu.matmul %1, %7, %cst_8 {dimension_numbers = #tpu.dot_dimension_numbers<[1], [0], [0], [1], [0, 0, 1, 1], [], []>} : vector<16x128xbf16>, vector<128x128xbf16>, vector<16x128xf32> -> vector<16x128xf32>
    %c0_9 = arith.constant 0 : index
    %c0_10 = arith.constant 0 : index
    %9 = vector.load %arg6[%c0_9, %c0_10] : memref<1x128xf32, #tpu.memory_space<vmem>>, vector<1x128xf32>
    %10 = vector.broadcast %9 : vector<1x128xf32> to vector<16x128xf32>
    %11 = arith.addf %8, %10 : vector<16x128xf32>
    %12 = arith.truncf %6 : vector<16x128xf32> to vector<16x128xbf16>
    %c0_11 = arith.constant 0 : index
    %c0_12 = arith.constant 0 : index
    %c0_13 = arith.constant 0 : index
    %13 = vector.load %arg7[%c0_11, %c0_12, %c0_13] : memref<1x16x128xbf16, #tpu.memory_space<vmem>>, vector<1x16x128xbf16>
    %14 = vector.shape_cast %13 : vector<1x16x128xbf16> to vector<16x128xbf16>
    %15 = vector.shape_cast %12 : vector<16x128xbf16> to vector<1x16x128xbf16>
    tpu.vector_store %arg7[%c0_11, %c0_12, %c0_13], %15 {strides = array<i32>} : memref<1x16x128xbf16, #tpu.memory_space<vmem>>, vector<1x16x128xbf16>,
    %16 = arith.truncf %11 : vector<16x128xf32> to vector<16x128xbf16>
    %c0_14 = arith.constant 0 : index
    %c0_15 = arith.constant 0 : index
    %c0_16 = arith.constant 0 : index
    %17 = vector.load %arg8[%c0_14, %c0_15, %c0_16] : memref<1x16x128xbf16, #tpu.memory_space<vmem>>, vector<1x16x128xbf16>
    %18 = vector.shape_cast %17 : vector<1x16x128xbf16> to vector<16x128xbf16>
    %19 = vector.shape_cast %16 : vector<16x128xbf16> to vector<1x16x128xbf16>
    tpu.vector_store %arg8[%c0_14, %c0_15, %c0_16], %19 {strides = array<i32>} : memref<1x16x128xbf16, #tpu.memory_space<vmem>>, vector<1x16x128xbf16>,
    return
  }
  func.func @transform_0(%arg0: i32, %arg1: i32) -> (i32, i32, i32) {
    %c0_i32 = arith.constant 0 : i32
    %c0_i32_0 = arith.constant 0 : i32
    return %arg0, %arg1, %c0_i32 : i32, i32, i32
  }
  func.func @transform_1(%arg0: i32, %arg1: i32) -> (i32, i32) {
    %c0_i32 = arith.constant 0 : i32
    %c0_i32_0 = arith.constant 0 : i32
    %c0_i32_1 = arith.constant 0 : i32
    return %c0_i32, %c0_i32_0 : i32, i32
  }
  func.func @transform_2(%arg0: i32, %arg1: i32) -> (i32, i32) {
    %c0_i32 = arith.constant 0 : i32
    %c0_i32_0 = arith.constant 0 : i32
    %c0_i32_1 = arith.constant 0 : i32
    return %c0_i32, %c0_i32_0 : i32, i32
  }
  func.func @transform_3(%arg0: i32, %arg1: i32) -> (i32, i32) {
    %c0_i32 = arith.constant 0 : i32
    %c0_i32_0 = arith.constant 0 : i32
    %c0_i32_1 = arith.constant 0 : i32
    return %c0_i32, %c0_i32_0 : i32, i32
  }
  func.func @transform_4(%arg0: i32, %arg1: i32) -> (i32, i32) {
    %c0_i32 = arith.constant 0 : i32
    %c0_i32_0 = arith.constant 0 : i32
    %c0_i32_1 = arith.constant 0 : i32
    return %c0_i32, %c0_i32_0 : i32, i32
  }
  func.func @transform_5(%arg0: i32, %arg1: i32) -> (i32, i32, i32) {
    %c0_i32 = arith.constant 0 : i32
    %c0_i32_0 = arith.constant 0 : i32
    return %arg0, %arg1, %c0_i32 : i32, i32, i32
  }
  func.func @transform_6(%arg0: i32, %arg1: i32) -> (i32, i32, i32) {
    %c0_i32 = arith.constant 0 : i32
    %c0_i32_0 = arith.constant 0 : i32
    return %arg0, %arg1, %c0_i32 : i32, i32, i32
  }
}

</mosaic_0001>

<bundles_post_ra>
// kernel: tpu_custom_call.1
= control target key start
LH: loop header
LB: loop body
LE: loop exit
PB: predicated region body
PF: predicated region fallthrough
CT: control target
= control target key end

     0   :  { %12 = vsyncpa [#allocation3], 0  ;;  %s1564_s0 = inlined_call_operand.hbm [shape: bf16[2,16,128], index: 0, kind: input, shape index: {}]   ;;  %s1565_s1 = inlined_call_operand.hbm [shape: bf16[128,128], index: 1, kind: input, shape index: {}]   ;;  %s1566_s2 = inlined_call_operand.vmem [shape: f32[1,128], index: 2, kind: input, shape index: {}]   ;;  %s1567_s3 = inlined_call_operand.hbm [shape: bf16[128,128], index: 3, kind: input, shape index: {}]   ;;  %s1568_s4 = inlined_call_operand.vmem [shape: f32[1,128], index: 4, kind: input, shape index: {}]   ;;  %s1569_s5 = inlined_call_operand.hbm [shape: bf16[2,16,128], index: 5, kind: output, shape index: {0}]   ;;  %s1570_s6 = inlined_call_operand.hbm [shape: bf16[2,16,128], index: 6, kind: output, shape index: {1}]  }
   0x1   :  { %14 = vsyncpa [#allocation3 + $0x1], 0 }
   0x2   :  { %15 = vsyncpa [#allocation6], 0 }
   0x3   :  { %16 = vsyncpa [#allocation4], 0 }
   0x4   :  { %18 = vsyncpa [#allocation4 + $0x1], 0 }
   0x5   :  { %19 = vsyncpa [#allocation10], 0 }
   0x6   :  { %21 = vsyncpa [#allocation10 + $0x1], 0  ;;  %s1250_s21 = smov 0   ;;  %s1252_s22 = smov 0  }
   0x7   :  { %s1254_s23 = smov 0   ;;  %s1256_s24 = smov 0  }
   0x8   :  { %s1258_s25 = smov 0   ;;  %s1260_s26 = smov 0  }
   0x9 LB: > { %s766_s27 = sadd.s32 4294967295, %s1202_s26   ;;  %s767_s28 = sadd.s32 4294967294, %s1202_s26   ;;  %s1202_s26 = sphi %s1260_s26, %s27_s26   ;;  %s1198_s25 = sphi %s1258_s25, %s1597_s25   ;;  %s1194_s24 = sphi %s1256_s24, %s1596_s24   ;;  %s1190_s23 = sphi %s1254_s23, %s1595_s23   ;;  %s1186_s22 = sphi %s1252_s22, %s1594_s22   ;;  %s1182_s21 = sphi %s1250_s21, %s1593_s21  }
   0xa   : > { %p61_p0 = scmp.ne.s32.totalorder %s1186_s22, %s1182_s21  ;;  %p1284_p1 = scmp.eq.s32.totalorder %s766_s27, 0 }
   0xb   : > { %p1288_p2 = scmp.eq.s32.totalorder %s766_s27, 1  ;;  %p177_p3 = scmp.eq.s32.totalorder %s767_s28, 1 }
   0xc   : > { %s1577_s29 = scalar_select %p1284_p1, 1, 0 }
   0xd   : > { %p1294_p4 = por %p1284_p1, %p61_p0  ;;  %p768_p5 = scmp.ge.s32.totalorder %s1202_s26, 1 }
   0xe   : > { %p1299_p6 = por %p177_p3, %p61_p0  ;;  %p212_p7 = scmp.lt.s32.totalorder %s1202_s26, 3 }
   0xf   : > { %s1579_s7 = scalar_select %p1294_p4, 1, 0 }
  0x10   : > { %s1580_s8 = scalar_select %p1299_p6, 1, 0 }
  0x11   : > { %p1304_p8 = pnand %p768_p5, %p212_p7  ;;  %s1204_s10 = smov [#allocation5]  }
  0x12   : > { %1581 = sst [smem:[#allocation15_spill]] %s1580_s8  ;;  %s224_s11 = sshll.u32 %s1204_s10, 4  ;;  %s1308_s11 = int_to_ptr.vmem [resolvable:$true] %s224_s11 }
  0x13   : > { %p901_p9 = pneg %p1304_p8  ;;  %s1205_s13 = smov [#allocation7]  }
  0x14   : > { %s240_s14 = sshll.u32 %s1205_s13, 4  ;;  %s998_s17 = scalar_lea.hbm %s1565_s1, 1024  ;;  %s1319_s14 = int_to_ptr.vmem [resolvable:$true] %s240_s14 }
  0x15   : > { %p1315_p11 = pnand %p901_p9, %p1284_p1  ;;  %p999_p12 = scmp.ne.s32.totalorder %s1565_s1, %s998_s17 }
  0x16   : > { %p1005_p5 = scmp.lt.u32.totalorder %s998_s17, %s1565_s1 }
  0x17   : > { %p1000_p13 = pneg %p1315_p11 }
  0x19   : > { %p1001_p0 = pnand %p1000_p13, %p999_p12 }
  0x1b   : > { %p1002_p3 = pneg %p1001_p0 }
  0x1d   : > { %p1007_p7 = pnand %p1005_p5, %p1002_p3 }
  0x1f   : > { %1010 = shalt.err (!%p1007_p7)
}
  0x20   : > { %s1011_s28 = scalar_lea.vmem %s1308_s11, 1024  ;;  %p1019_p1 = scmp.lt.s32.totalorder %s1308_s11, %s1308_s11 }
  0x21   : > { %p1012_p9 = scmp.ne.s32.totalorder %s1308_s11, %s1011_s28  ;;  %p1020_p12 = scmp.lt.s32.totalorder %s1011_s28, %s1011_s28 }
  0x23   : > { %p1014_p10 = pnand %p1012_p9, %p1000_p13  ;;  %p1021_p0 = por %p1020_p12, %p1019_p1 }
  0x25   : > { %p1015_p6 = pneg %p1014_p10 }
  0x27   : > { %p1022_p4 = pnand %p1021_p0, %p1015_p6 }
  0x29   : > { %1025 = shalt.err (!%p1022_p4)
}
  0x2a   : > { %s1575_s10 = smov 64   ;;  %s1207_s13 = smov 4  }
  0x2b   : > { %904 = dma.hbm_to_vmem [thread:$0]  (!%p1315_p11), %s1565_s1, 1024, %s1308_s11, [#allocation6], %s1575_s10, %s1575_s10, %s1207_s13  }
  0x2c   : > { %s1026_s19 = scalar_lea.hbm %s1567_s3, 1024 }
  0x2d   : > { %p1027_p1 = scmp.ne.s32.totalorder %s1567_s3, %s1026_s19  ;;  %p1033_p10 = scmp.lt.u32.totalorder %s1026_s19, %s1567_s3 }
  0x2f   : > { %p1029_p4 = pnand %p1027_p1, %p1000_p13 }
  0x31   : > { %p1030_p6 = pneg %p1029_p4 }
  0x33   : > { %p1035_p3 = pnand %p1033_p10, %p1030_p6 }
  0x35   : > { %1038 = shalt.err (!%p1035_p3)
}
  0x36   : > { %s1039_s11 = scalar_lea.vmem %s1319_s14, 1024  ;;  %p1047_p12 = scmp.lt.s32.totalorder %s1319_s14, %s1319_s14 }
  0x37   : > { %p1040_p5 = scmp.ne.s32.totalorder %s1319_s14, %s1039_s11  ;;  %p1048_p0 = scmp.lt.s32.totalorder %s1039_s11, %s1039_s11 }
  0x39   : > { %p1042_p7 = pnand %p1040_p5, %p1000_p13  ;;  %p1049_p1 = por %p1048_p0, %p1047_p12 }
  0x3b   : > { %p1043_p9 = pneg %p1042_p7 }
  0x3d   : > { %p1050_p4 = pnand %p1049_p1, %p1043_p9 }
  0x3f   : > { %1053 = shalt.err (!%p1050_p4)
}
  0x40   : > { %907 = dma.hbm_to_vmem [thread:$0]  (!%p1315_p11), %s1567_s3, 1024, %s1319_s14, [#allocation6], %s1575_s10, %s1575_s10, %s1207_s13  }
  0x41   : > { %s39_s12 = sadd.s32 1, %s1198_s25  ;;  %s48_s16 = sadd.s32 1, %s1190_s23 }
  0x42   : > { %p41_p13 = scmp.ge.s32.totalorder %s39_s12, 2  ;;  %p55_p6 = scmp.ne.s32.totalorder %s1190_s23, %s1186_s22 }
  0x43   : > { %p56_p10 = scmp.eq.s32.totalorder %s1202_s26, 0  ;;  %p921_p3 = scmp.lt.s32.totalorder %s1202_s26, 2 }
  0x44   : > { %s1599_s12 = smov (%p41_p13, %s39_s12), 0  ;;  %p1389_p7 = por %p1288_p2, %p55_p6 }
  0x45   : > { %p57_p5 = por %p56_p10, %p55_p6  ;;  %s43_s18 = ssub.s32 %s1198_s25, %s1599_s12 }
  0x46   : > { %s1584_s17 = scalar_select %p1389_p7, 1, 0 }
  0x47   : > { %s257_s19 = sand.u32 1, %s1190_s23   ;;  %p46_p9 = scmp.eq.s32.totalorder %s43_s18, 0 }
  0x48   : > { %s772_s14 = sshll.u32 %s257_s19, 3  ;;  %s812_s20 = sshll.u32 %s1198_s25, 7 }
  0x49   : > { %s1398_s27 = scalar_select %p46_p9, %s1190_s23, %s48_s16  }
  0x4a   : > { %s1403_s8 = scalar_lea.hbm %s1564_s0, %s812_s20  ;;  %s261_s30 = scalar_lea.vmem [#allocation2], %s772_s14 }
  0x4b   : > { %s270_s15 = sshll.u32 %s261_s30, 4  ;;  %p1407_p2 = pnand %p921_p3, %p57_p5  ;;  %s1411_s15 = int_to_ptr.vmem [resolvable:$true] %s270_s15 }
  0x4c   : > { %s1413_s16 = scalar_lea.sflag [#allocation3], %s257_s19  ;;  %s1054_s18 = scalar_lea.hbm %s1403_s8, 128 }
  0x4d   : > { %p1055_p11 = scmp.ne.s32.totalorder %s1403_s8, %s1054_s18  ;;  %p1056_p12 = pneg %p1407_p2 }
  0x4e   : > { %s1059_s28 = scalar_lea.hbm %s1564_s0, 256  ;;  %p1060_p4 = scmp.lt.u32.totalorder %s1403_s8, %s1564_s0 }
  0x4f   : > { %p1057_p0 = pnand %p1056_p12, %p1055_p11  ;;  %p1061_p13 = scmp.lt.u32.totalorder %s1059_s28, %s1054_s18 }
  0x50   : > { %p1063_p10 = scmp.lt.u32.totalorder %s1054_s18, %s1403_s8 }
  0x51   : > { %p1058_p1 = pneg %p1057_p0  ;;  %p1062_p6 = por %p1061_p13, %p1060_p4 }
  0x53   : > { %p1064_p3 = por %p1063_p10, %p1062_p6 }
  0x55   : > { %p1065_p5 = pnand %p1064_p3, %p1058_p1 }
  0x57   : > { %1068 = shalt.err (!%p1065_p5)
}
  0x58   : > { %s1069_s19 = scalar_lea.vmem %s1411_s15, 128  ;;  %s1208_s14 = smov [#allocation2]  }
  0x59   : > { %p1070_p9 = scmp.ne.s32.totalorder %s1411_s15, %s1069_s19  ;;  %s1074_s20 = sshll.u32 %s1208_s14, 4  ;;  %s1075_s20 = int_to_ptr.vmem [resolvable:$false] %s1074_s20 }
  0x5a   : > { %s1076_s11 = scalar_lea.vmem %s1075_s20, 256  ;;  %p1077_p7 = scmp.lt.s32.totalorder %s1411_s15, %s1075_s20 }
  0x5b   : > { %p1072_p11 = pnand %p1070_p9, %p1056_p12  ;;  %p1078_p4 = scmp.lt.s32.totalorder %s1076_s11, %s1069_s19 }
  0x5d   : > { %p1073_p0 = pneg %p1072_p11  ;;  %p1079_p13 = por %p1078_p4, %p1077_p7 }
  0x5f   : > { %p1080_p6 = pnand %p1079_p13, %p1073_p0 }
  0x61   : > { %1083 = shalt.err (!%p1080_p6)
}
  0x62   : > { %s1586_s18 = smov 64   ;;  %282 = sbr.rel (%p1304_p8) target bundleno = 399 (0x18f), region = 40 }
  0x63   : > { %911 = dma.hbm_to_vmem [thread:$0]  (!%p1407_p2), %s1403_s8, 128, %s1411_s15, %s1413_s16, %s1586_s18, %s1586_s18, %s1207_s13  }
  0x64   : > { %s1447_s28 = sand.u32 (!%p1304_p8), 1, %s1186_s22   ;;  %p1587_p7 = scmp.ne.s32.totalorder (!%p1304_p8), %s1579_s7, 0 }
  0x65   : > { %s1450_s30 = sshll.u32 (!%p1304_p8), %s1447_s28, 3  ;;  %s285_s10 = scalar_lea.sflag (!%p1304_p8), [#allocation3], %s1447_s28 }
  0x66   : > { %s288_s19 = scalar_lea.vmem (!%p1304_p8), [#allocation2], %s1450_s30 }
  0x69   : > { %1165 = dma.done.wait (%p1587_p7), %s285_s10, 128  }
  0x6a   : > { %1167 = vsyncadd (%p1587_p7), %s285_s10, 4294967168  ;;  %p1588_p2 = scmp.ne.s32.totalorder %s1577_s29, 0 }
  0x6c   : > { %1169 = dma.done.wait (%p1588_p2), [#allocation6], 2048  }
  0x6d   : > { %1171 = vsyncadd (%p1588_p2), [#allocation6], 4294965248  ;;  %v1209_v0 = vmov 0.0   ;;  %vm1210_vm0 = vmmov 0   ;;  %v981_v1 = vld [vmem:[#allocation5] sm:$0xff]   ;;  %v983_v3 = vld [vmem:[#allocation5 + $0x8] sm:$0xff]  }
  0x6e   : > { %847 = vmatprep.subr.bf16.mxu0 %v1209_v0  ;;  %867 = vmatprep.subr.bf16.mxu1 %v1209_v0  ;;  %v982_v2 = vld [vmem:[#allocation7] sm:$0xff]   ;;  %v984_v4 = vld [vmem:[#allocation7 + $0x8] sm:$0xff]   ;;  %v985_v5 = vld [vmem:[#allocation5 + $0x10] sm:$0xff]   ;;  %s322_s9 = scalar_lea.vmem [#allocation8], %s1450_s30  ;;  %s329_s8 = scalar_lea.vmem [#allocation9], %s1450_s30 }
  0x6f   : > { %863 = vmatprep.mubr.msk.bf16.mxu0 %vm1210_vm0, %v1209_v0  ;;  %883 = vmatprep.mubr.msk.bf16.mxu1 %vm1210_vm0, %v1209_v0  ;;  %v986_v6 = vld [vmem:[#allocation7 + $0x10] sm:$0xff]   ;;  %v987_v7 = vld [vmem:[#allocation5 + $0x18] sm:$0xff]   ;;  %v989_v9 = vld [vmem:[#allocation5 + $0x20] sm:$0xff]   ;;  %s607_s13 = sshll.u32 %s322_s9, 4  ;;  %s625_s15 = sshll.u32 %s329_s8, 4  ;;  %s1473_s13 = int_to_ptr.vmem [resolvable:$true] %s607_s13  ;;  %s1475_s15 = int_to_ptr.vmem [resolvable:$true] %s625_s15 }
  0x70   : > { %848 = vmatpush3.bf16.msra.mxu0 %v981_v1  ;;  %868 = vmatpush3.bf16.msra.mxu1 %v982_v2  ;;  %v988_v8 = vld [vmem:[#allocation7 + $0x18] sm:$0xff]   ;;  %v990_v10 = vld [vmem:[#allocation7 + $0x20] sm:$0xff]   ;;  %v991_v11 = vld [vmem:[#allocation5 + $0x28] sm:$0xff]   ;;  %s817_s20 = sshll.u32 %s1194_s24, 7  ;;  %s587_s29 = scalar_lea.sflag [#allocation4], %s1447_s28 }
  0x71   : > { %849 = vmatprep.subr.bf16.mxu0 %v1209_v0  ;;  %869 = vmatprep.subr.bf16.mxu1 %v1209_v0  ;;  %v992_v12 = vld [vmem:[#allocation7 + $0x28] sm:$0xff]   ;;  %v993_v13 = vld [vmem:[#allocation5 + $0x30] sm:$0xff]   ;;  %v995_v15 = vld [vmem:[#allocation5 + $0x38] sm:$0xff]   ;;  %s1480_s24 = scalar_lea.hbm %s1569_s5, %s817_s20  ;;  %s1084_s7 = scalar_lea.vmem %s1473_s13, 128 }
  0x72   : > { %v994_v14 = vld [vmem:[#allocation7 + $0x30] sm:$0xff]   ;;  %v996_v16 = vld [vmem:[#allocation7 + $0x38] sm:$0xff]   ;;  %p1085_p8 = scmp.ne.s32.totalorder %s1473_s13, %s1084_s7  ;;  %p1589_p12 = scmp.ne.s32.totalorder %s1584_s17, 0 }
  0x73   : > { %v997_v17 = vld [vmem:[%s288_s19] sm:$0xff]   ;;  %s1485_s19 = scalar_lea.hbm %s1570_s6, %s817_s20  ;;  %s1211_s16 = smov [#allocation8]  }
  0x74   : > { %850 = vmatpush3.bf16.msra.mxu0 %v983_v3  ;;  %870 = vmatpush3.bf16.msra.mxu1 %v984_v4  ;;  %v781_v18 = vld [vmem:[%s1566_s2] ss:$0 sm:$0xff]  ;;  %p1086_p1 = pnand %p1085_p8, %p1589_p12  ;;  %s1088_s14 = sshll.u32 %s1211_s16, 4  ;;  %s1089_s14 = int_to_ptr.vmem [resolvable:$false] %s1088_s14 }
  0x75   : > { %851 = vmatprep.subr.bf16.mxu0 %v1209_v0  ;;  %871 = vmatprep.subr.bf16.mxu1 %v1209_v0  ;;  %v791_v20 = vld [vmem:[%s1568_s4] ss:$0 sm:$0xff]  ;;  %s1090_s11 = scalar_lea.vmem %s1089_s14, 256  ;;  %p1091_p3 = scmp.lt.s32.totalorder %s1473_s13, %s1089_s14 }
  0x76   : > { %p1087_p10 = pneg %p1086_p1  ;;  %p1092_p5 = scmp.lt.s32.totalorder %s1090_s11, %s1084_s7 }
  0x78   : > { %852 = vmatpush3.bf16.msra.mxu0 %v985_v5  ;;  %872 = vmatpush3.bf16.msra.mxu1 %v986_v6  ;;  %p1093_p9 = por %p1092_p5, %p1091_p3 }
  0x79   : > { %853 = vmatprep.subr.bf16.mxu0 %v1209_v0  ;;  %873 = vmatprep.subr.bf16.mxu1 %v1209_v0 }
  0x7a   : > { %p1094_p11 = pnand %p1093_p9, %p1087_p10 }
  0x7c   : > { %854 = vmatpush3.bf16.msra.mxu0 %v987_v7  ;;  %874 = vmatpush3.bf16.msra.mxu1 %v988_v8 }
  0x7d   : > { %855 = vmatprep.subr.bf16.mxu0 %v1209_v0  ;;  %875 = vmatprep.subr.bf16.mxu1 %v1209_v0 }
  0x80   : > { %856 = vmatpush3.bf16.msra.mxu0 %v989_v9  ;;  %876 = vmatpush3.bf16.msra.mxu1 %v990_v10 }
  0x81   : > { %857 = vmatprep.subr.bf16.mxu0 %v1209_v0  ;;  %877 = vmatprep.subr.bf16.mxu1 %v1209_v0 }
  0x84   : > { %858 = vmatpush3.bf16.msra.mxu0 %v991_v11  ;;  %878 = vmatpush3.bf16.msra.mxu1 %v992_v12 }
  0x85   : > { %859 = vmatprep.subr.bf16.mxu0 %v1209_v0  ;;  %879 = vmatprep.subr.bf16.mxu1 %v1209_v0 }
  0x88   : > { %860 = vmatpush3.bf16.msra.mxu0 %v993_v13  ;;  %880 = vmatpush3.bf16.msra.mxu1 %v994_v14 }
  0x89   : > { %861 = vmatprep.subr.bf16.mxu0 %v1209_v0  ;;  %881 = vmatprep.subr.bf16.mxu1 %v1209_v0 }
  0x8c   : > { %862 = vmatpush3.bf16.msra.mxu0 %v995_v15  ;;  %882 = vmatpush3.bf16.msra.mxu1 %v996_v16 }
  0x8f   : > { %864 = vmatmul.mubr.bf16.vlgmr.msra.gmra.mrb[0].mxu0 %v997_v17  ;;  %884 = vmatmul.mubr.bf16.vlgmr.msra.gmra.mrb[0].mxu1 %v997_v17 }
 0x162   : > { %v447_v19 = vpop.f32.mrb[0].mxu0  ;;  %v559_v21 = vpop.f32.mrb[0].mxu1 }
 0x163   : > { %v865_v22 = vpop.f32.mrb[1].mxu0  ;;  %v885_v23 = vpop.f32.mrb[1].mxu1  ;;  %v448_v25 = vadd.f32 %v781_v18, %v447_v19  ;;  %v560_v29 = vadd.f32 %v791_v20, %v559_v21 }
 0x164   : > { %v450_v24 = vpop.f32.mrb[2].mxu0  ;;  %v562_v27 = vpop.f32.mrb[2].mxu1 }
 0x165   : > { %v451_v26 = vadd.f32 %v781_v18, %v450_v24  ;;  %v866_v28 = vpop.f32.mrb[3].mxu0  ;;  %v563_v30 = vadd.f32 %v791_v20, %v562_v27  ;;  %v886_v31 = vpop.f32.mrb[3].mxu1 }
 0x167   : > { %v822_v32 = vpack.c.bf16 %v451_v26, %v448_v25  ;;  %v827_v33 = vpack.c.bf16 %v563_v30, %v560_v29 }
 0x169   : > { %823 = vst [vmem:[%s322_s9] sm:$0xff] %v822_v32   ;;  %828 = vst [vmem:[%s329_s8] sm:$0xff] %v827_v33  }
 0x16a   : > { %1097 = shalt.err (!%p1094_p11)
}
 0x16b   : > { %s1098_s9 = scalar_lea.hbm %s1480_s24, 128  ;;  %s1102_s18 = scalar_lea.hbm %s1569_s5, 256 }
 0x16c   : > { %p1099_p0 = scmp.ne.s32.totalorder %s1480_s24, %s1098_s9  ;;  %p1103_p6 = scmp.lt.u32.totalorder %s1480_s24, %s1569_s5 }
 0x16d   : > { %p1104_p7 = scmp.lt.u32.totalorder %s1102_s18, %s1098_s9  ;;  %p1106_p8 = scmp.lt.u32.totalorder %s1098_s9, %s1480_s24 }
 0x16e   : > { %p1100_p4 = pnand %p1099_p0, %p1589_p12 }
 0x16f   : > { %p1105_p2 = por %p1104_p7, %p1103_p6 }
 0x170   : > { %p1101_p13 = pneg %p1100_p4 }
 0x171   : > { %p1107_p1 = por %p1106_p8, %p1105_p2 }
 0x173   : > { %p1108_p10 = pnand %p1107_p1, %p1101_p13 }
 0x175   : > { %1111 = shalt.err (!%p1108_p10)
}
 0x176   : > { %s1212_s7 = smov 64   ;;  %s1213_s16 = smov 4  }
 0x177   : > { %897 = dma.vmem_to_hbm [thread:$0]  (%p1589_p12), %s1473_s13, 128, %s1480_s24, %s587_s29, %s1212_s7, %s1212_s7, %s1213_s16  }
 0x178   : > { %s592_s14 = scalar_lea.sflag [#allocation10], %s1447_s28  ;;  %s1112_s11 = scalar_lea.vmem %s1475_s15, 128 }
 0x179   : > { %p1113_p3 = scmp.ne.s32.totalorder %s1475_s15, %s1112_s11  ;;  %s1214_s9 = smov [#allocation9]  }
 0x17a   : > { %s1116_s8 = sshll.u32 %s1214_s9, 4  ;;  %s1117_s8 = int_to_ptr.vmem [resolvable:$false] %s1116_s8 }
 0x17b   : > { %p1114_p5 = pnand %p1113_p3, %p1589_p12  ;;  %s1118_s20 = scalar_lea.vmem %s1117_s8, 256 }
 0x17c   : > { %p1119_p11 = scmp.lt.s32.totalorder %s1475_s15, %s1117_s8  ;;  %p1120_p0 = scmp.lt.s32.totalorder %s1118_s20, %s1112_s11 }
 0x17d   : > { %p1115_p9 = pneg %p1114_p5 }
 0x17e   : > { %p1121_p4 = por %p1120_p0, %p1119_p11 }
 0x180   : > { %p1122_p13 = pnand %p1121_p4, %p1115_p9 }
 0x182   : > { %1125 = shalt.err (!%p1122_p13)
}
 0x183   : > { %s1126_s13 = scalar_lea.hbm %s1485_s19, 128  ;;  %s1130_s18 = scalar_lea.hbm %s1570_s6, 256 }
 0x184   : > { %p1127_p6 = scmp.ne.s32.totalorder %s1485_s19, %s1126_s13  ;;  %p1131_p8 = scmp.lt.u32.totalorder %s1485_s19, %s1570_s6 }
 0x185   : > { %p1132_p1 = scmp.lt.u32.totalorder %s1130_s18, %s1126_s13  ;;  %p1134_p3 = scmp.lt.u32.totalorder %s1126_s13, %s1485_s19 }
 0x186   : > { %p1128_p7 = pnand %p1127_p6, %p1589_p12 }
 0x187   : > { %p1133_p10 = por %p1132_p1, %p1131_p8 }
 0x188   : > { %p1129_p2 = pneg %p1128_p7 }
 0x189   : > { %p1135_p5 = por %p1134_p3, %p1133_p10 }
 0x18b   : > { %p1136_p9 = pnand %p1135_p5, %p1129_p2 }
 0x18d   : > { %1139 = shalt.err (!%p1136_p9)
}
 0x18e   : > { %898 = dma.vmem_to_hbm [thread:$0]  (%p1589_p12), %s1475_s15, 128, %s1485_s19, %s592_s14, %s1212_s7, %s1212_s7, %s1213_s16  }
 0x18f PF: > { %s1590_s11 = sld [smem:[#allocation15_spill]]  ;;  %s640_s9 = sand.u32 1, %s1182_s21  }
 0x190   : > { %p1592_p0 = scmp.ge.s32.totalorder %s1202_s26, 2  ;;  %s641_s8 = scalar_lea.sflag [#allocation4], %s640_s9 }
 0x195   : > { %p1591_p11 = scmp.ne.s32.totalorder %s1590_s11, 0 }
 0x197   : > { %p913_p4 = pnand %p1592_p0, %p1591_p11 }
 0x199   : > { %1173 = dma.done.wait (!%p913_p4), %s641_s8, 128  }
 0x19a   : > { %1175 = vsyncadd (!%p913_p4), %s641_s8, 4294967168  ;;  %s650_s17 = scalar_lea.sflag [#allocation10], %s640_s9 }
 0x19b   : > { %1177 = dma.done.wait (!%p913_p4), %s650_s17, 128  }
 0x19c   : > { %1179 = vsyncadd (!%p913_p4), %s650_s17, 4294967168  ;;  %s27_s26 = sadd.s32 1, %s1202_s26   ;;  %s1593_s21 = smov %s1186_s22 }
 0x19d   : > { %p24_p13 = scmp.ge.s32.totalorder %s27_s26, 4   ;;  %s1594_s22 = smov %s1190_s23 }
 0x19e   : > { %s1595_s23 = smov %s1398_s27  ;;  %s1596_s24 = smov %s1198_s25 }
 0x19f   : > { %s1597_s25 = smov %s1599_s12  ;;  %26 = sbr.rel (!%p24_p13) target bundleno = 9 (0x9), region = 110 }
 0x1a6   :  { %655 = vsyncpa [#allocation3], 1 }
 0x1a7   :  { %657 = vsyncpa [#allocation3 + $0x1], 1 }
 0x1a8   :  { %658 = vsyncpa [#allocation6], 1 }
 0x1a9   :  { %659 = vsyncpa [#allocation4], 1 }
 0x1aa   :  { %661 = vsyncpa [#allocation4 + $0x1], 1 }
 0x1ab   :  { %662 = vsyncpa [#allocation10], 1 }
 0x1ac   :  { %664 = vsyncpa [#allocation10 + $0x1], 1 }

</bundles_post_ra>
